<compile_context>
chip_gen: v5e
topology: v5e:2x2
jax: 0.10.0
libtpu: 0.0.40
codegen_flags: <defaults>
</compile_context>

<pallas_src>
import functools

import jax
import jax.numpy as jnp
from jax.experimental import pallas as pl
from jax.experimental.pallas import tpu as pltpu


def _se_kernel(x_ref, w1t_ref, w2_ref, o_ref, *, inv_hw):
    # x_ref/o_ref: (B_N, C, HWp) VMEM tile for the current batch group.
    # w1t_ref: (C, R) = fc1.weight.T ; w2_ref: (C, R) = fc2.weight (native layout).
    x = x_ref[...]                                                   # (B, C, HWp), input dtype

    # Squeeze: global average pool over the spatial (lane) axis, f32 accumulation.
    # HW padding lanes are zero so they don't perturb the sum; divide by true HW.
    pooled = jnp.sum(x.astype(jnp.float32), axis=-1, keepdims=True) * inv_hw    # (B, C, 1)

    # Excitation FC1 + ReLU: h[b, r] = relu(sum_c W1[r, c] * pooled[b, c])  (sublane reduce)
    h = jnp.sum(w1t_ref[...][None, :, :] * pooled, axis=1, keepdims=True)       # (B, 1, R)
    h = jnp.maximum(h, 0.0)

    # Excitation FC2 + sigmoid: gate[b, c] = sigmoid(sum_r W2[c, r] * h[b, r])  (lane reduce)
    y_lin = jnp.sum(w2_ref[...][None, :, :] * h, axis=-1, keepdims=True)        # (B, C, 1)
    gate = 1.0 / (1.0 + jnp.exp(-y_lin))                                        # (B, C, 1), f32

    # Scale: broadcast gate over spatial lanes; multiply in the input dtype so bf16
    # slabs are never materialized in f32. Single fused store.
    o_ref[...] = (x * gate.astype(x.dtype)).astype(o_ref.dtype)


def _pick_batch_block(n, per_batch_bytes, target_bytes=2 << 20):
    """Largest divisor of n whose per-step input tile stays <= target_bytes."""
    best = 1
    for d in range(1, n + 1):
        if n % d == 0 and d * per_batch_bytes <= target_bytes:
            best = d
    return best


def se_layer(x, w1, w2):
    """SELayer forward.

    x : (N, C, H, W)
    w1: (C // reduction, C)   -- fc[0].weight (Linear, bias=False)
    w2: (C, C // reduction)   -- fc[2].weight (Linear, bias=False)
    """
    N, C, H, W = x.shape
    R = w1.shape[0]
    assert w1.shape == (R, C) and w2.shape == (C, R)

    hw = H * W
    hw_p = ((hw + 127) // 128) * 128       # enforce a lane-dense (multiple-of-128) last dim
    x2 = x.reshape(N, C, hw)
    if hw_p != hw:
        x2 = jnp.pad(x2, ((0, 0), (0, 0), (0, hw_p - hw)))

    w1t = jnp.transpose(w1)                # (C, R): avoids any transpose inside the kernel

    itemsize = jnp.dtype(x.dtype).itemsize
    per_batch_bytes = C * hw_p * itemsize
    bn = _pick_batch_block(N, per_batch_bytes)       # batch elements per grid step
    tile_bytes = bn * per_batch_bytes

    # 2x double-buffered input tiles + 2x output tiles + (tiny) weights + headroom,
    # capped at 48 MiB so it fits v7x's 64 MiB/TC with margin (v5e/v6e have 128 MiB).
    w_bytes = 2 * C * R * 4
    vmem_limit = int(min(max(4 * tile_bytes + 2 * w_bytes + (2 << 20), 32 << 20), 48 << 20))

    kernel = functools.partial(_se_kernel, inv_hw=float(1.0 / hw))

    out2 = pl.pallas_call(
        kernel,
        out_shape=jax.ShapeDtypeStruct((N, C, hw_p), x.dtype),
        grid=(N // bn,),
        in_specs=[
            pl.BlockSpec((bn, C, hw_p), lambda n: (n, 0, 0)),   # (B_N, C, HWp) batch-group slab
            pl.BlockSpec((C, R), lambda n: (0, 0)),             # weights: resident, same block
            pl.BlockSpec((C, R), lambda n: (0, 0)),
        ],
        out_specs=pl.BlockSpec((bn, C, hw_p), lambda n: (n, 0, 0)),
        compiler_params=pltpu.CompilerParams(
            dimension_semantics=("parallel",),   # megacore-shardable over batch groups
            vmem_limit_bytes=vmem_limit,
        ),
    )(x2, w1t, w2)

    if hw_p != hw:
        out2 = out2[:, :, :hw]
    return out2.reshape(N, C, H, W)


if __name__ == "__main__":
    key = jax.random.PRNGKey(0)
    k_x, k_w1, k_w2 = jax.random.split(key, 3)

    # Small shapes consistent with the module: reduction=16 => C must be >= 16.
    N, C, H, W = 2, 32, 16, 16
    reduction = 16
    R = C // reduction

    x = jax.random.uniform(k_x, (N, C, H, W), dtype=jnp.float32)
    # PyTorch Linear default init: U(-1/sqrt(fan_in), 1/sqrt(fan_in)).
    w1 = jax.random.uniform(k_w1, (R, C), dtype=jnp.float32,
                            minval=-1.0 / (C ** 0.5), maxval=1.0 / (C ** 0.5))
    w2 = jax.random.uniform(k_w2, (C, R), dtype=jnp.float32,
                            minval=-1.0 / (R ** 0.5), maxval=1.0 / (R ** 0.5))

    out = jax.block_until_ready(se_layer(x, w1, w2))

    # Pure-JAX reference (same math as the PyTorch module).
    pooled = jnp.mean(x, axis=(2, 3))                        # (N, C)
    h = jnp.maximum(pooled @ w1.T, 0.0)                      # (N, R)
    gate = jax.nn.sigmoid(h @ w2.T)                          # (N, C)
    ref = x * gate[:, :, None, None]

    assert out.shape == x.shape and out.dtype == x.dtype
    assert jnp.allclose(out, ref, atol=1e-5, rtol=1e-5), float(jnp.max(jnp.abs(out - ref)))

    print("KERNEL_OK")
</pallas_src>

<mosaic_0001>
module attributes {stable_mosaic.version = 11 : i64} {
  func.func @_se_kernel(%arg0: i32, %arg1: memref<2x32x256xf32, #tpu.memory_space<vmem>>, %arg2: memref<32x2xf32, #tpu.memory_space<vmem>>, %arg3: memref<32x2xf32, #tpu.memory_space<vmem>>, %arg4: memref<2x32x256xf32, #tpu.memory_space<vmem>>) attributes {dimension_semantics = [#tpu.dimension_semantics<parallel>], iteration_bounds = array<i64: 1>, scalar_prefetch = 0 : i64, scratch_operands = 0 : i64, tpu.core_type = #tpu.core_type<tc>, window_params = [{transform_indices = @transform_0, window_bounds = array<i64: 2, 32, 256>}, {pipeline_mode = #tpu.pipeline_mode<synchronous>, transform_indices = @transform_1, window_bounds = array<i64: 32, 2>}, {pipeline_mode = #tpu.pipeline_mode<synchronous>, transform_indices = @transform_2, window_bounds = array<i64: 32, 2>}, {transform_indices = @transform_3, window_bounds = array<i64: 2, 32, 256>}]} {
    %c0 = arith.constant 0 : index
    %c0_0 = arith.constant 0 : index
    %c0_1 = arith.constant 0 : index
    %0 = vector.load %arg1[%c0, %c0_0, %c0_1] : memref<2x32x256xf32, #tpu.memory_space<vmem>>, vector<2x32x256xf32>
    %cst = arith.constant dense<0.000000e+00> : vector<2x32xf32>
    %1 = vector.multi_reduction <add>, %0, %cst [2] : vector<2x32x256xf32> to vector<2x32xf32>
    %2 = vector.shape_cast %1 : vector<2x32xf32> to vector<2x32x1xf32>
    %cst_2 = arith.constant 3.906250e-03 : f32
    %3 = vector.broadcast %cst_2 : f32 to vector<2x32x1xf32>
    %4 = arith.mulf %2, %3 : vector<2x32x1xf32>
    %c0_3 = arith.constant 0 : index
    %c0_4 = arith.constant 0 : index
    %5 = vector.load %arg2[%c0_3, %c0_4] : memref<32x2xf32, #tpu.memory_space<vmem>>, vector<32x2xf32>
    %6 = vector.shape_cast %5 : vector<32x2xf32> to vector<1x32x2xf32>
    %7 = vector.broadcast %6 : vector<1x32x2xf32> to vector<2x32x2xf32>
    %8 = vector.broadcast %4 : vector<2x32x1xf32> to vector<2x32x2xf32>
    %9 = arith.mulf %7, %8 : vector<2x32x2xf32>
    %cst_5 = arith.constant dense<0.000000e+00> : vector<2x2xf32>
    %10 = vector.multi_reduction <add>, %9, %cst_5 [1] : vector<2x32x2xf32> to vector<2x2xf32>
    %11 = vector.shape_cast %10 : vector<2x2xf32> to vector<2x1x2xf32>
    %cst_6 = arith.constant 0.000000e+00 : f32
    %12 = vector.broadcast %cst_6 : f32 to vector<2x1x2xf32>
    %13 = arith.maximumf %11, %12 : vector<2x1x2xf32>
    %c0_7 = arith.constant 0 : index
    %c0_8 = arith.constant 0 : index
    %14 = vector.load %arg3[%c0_7, %c0_8] : memref<32x2xf32, #tpu.memory_space<vmem>>, vector<32x2xf32>
    %15 = vector.shape_cast %14 : vector<32x2xf32> to vector<1x32x2xf32>
    %16 = vector.broadcast %15 : vector<1x32x2xf32> to vector<2x32x2xf32>
    %17 = vector.broadcast %13 : vector<2x1x2xf32> to vector<2x32x2xf32>
    %18 = arith.mulf %16, %17 : vector<2x32x2xf32>
    %cst_9 = arith.constant dense<0.000000e+00> : vector<2x32xf32>
    %19 = vector.multi_reduction <add>, %18, %cst_9 [2] : vector<2x32x2xf32> to vector<2x32xf32>
    %20 = vector.shape_cast %19 : vector<2x32xf32> to vector<2x32x1xf32>
    %cst_10 = arith.constant 0.000000e+00 : f32
    %21 = vector.broadcast %cst_10 : f32 to vector<2x32x1xf32>
    %22 = arith.subf %21, %20 : vector<2x32x1xf32>
    %23 = math.exp %22 : vector<2x32x1xf32>
    %cst_11 = arith.constant 1.000000e+00 : f32
    %24 = vector.broadcast %cst_11 : f32 to vector<2x32x1xf32>
    %25 = arith.addf %24, %23 : vector<2x32x1xf32>
    %cst_12 = arith.constant 1.000000e+00 : f32
    %26 = vector.broadcast %cst_12 : f32 to vector<2x32x1xf32>
    %27 = arith.divf %26, %25 : vector<2x32x1xf32>
    %28 = vector.broadcast %27 : vector<2x32x1xf32> to vector<2x32x256xf32>
    %29 = arith.mulf %0, %28 : vector<2x32x256xf32>
    %c0_13 = arith.constant 0 : index
    %c0_14 = arith.constant 0 : index
    %c0_15 = arith.constant 0 : index
    %30 = vector.load %arg4[%c0_13, %c0_14, %c0_15] : memref<2x32x256xf32, #tpu.memory_space<vmem>>, vector<2x32x256xf32>
    tpu.vector_store %arg4[%c0_13, %c0_14, %c0_15], %29 {strides = array<i32>} : memref<2x32x256xf32, #tpu.memory_space<vmem>>, vector<2x32x256xf32>,
    return
  }
  func.func @transform_0(%arg0: i32) -> (i32, i32, i32) {
    %c0_i32 = arith.constant 0 : i32
    %c0_i32_0 = arith.constant 0 : i32
    %c0_i32_1 = arith.constant 0 : i32
    return %arg0, %c0_i32, %c0_i32_0 : i32, i32, i32
  }
  func.func @transform_1(%arg0: i32) -> (i32, i32) {
    %c0_i32 = arith.constant 0 : i32
    %c0_i32_0 = arith.constant 0 : i32
    %c0_i32_1 = arith.constant 0 : i32
    return %c0_i32, %c0_i32_0 : i32, i32
  }
  func.func @transform_2(%arg0: i32) -> (i32, i32) {
    %c0_i32 = arith.constant 0 : i32
    %c0_i32_0 = arith.constant 0 : i32
    %c0_i32_1 = arith.constant 0 : i32
    return %c0_i32, %c0_i32_0 : i32, i32
  }
  func.func @transform_3(%arg0: i32) -> (i32, i32, i32) {
    %c0_i32 = arith.constant 0 : i32
    %c0_i32_0 = arith.constant 0 : i32
    %c0_i32_1 = arith.constant 0 : i32
    return %arg0, %c0_i32, %c0_i32_0 : i32, i32, i32
  }
}

</mosaic_0001>

<bundles_post_ra>
// kernel: tpu_custom_call.1
= control target key start
LH: loop header
LB: loop body
LE: loop exit
PB: predicated region body
PF: predicated region fallthrough
CT: control target
= control target key end

     0   :  { %8 = vsyncpa [#allocation3], 0  ;;  %s663_s0 = inlined_call_operand.hbm [shape: f32[2,32,256], index: 0, kind: input, shape index: {}]   ;;  %s664_s1 = inlined_call_operand.vmem [shape: f32[32,2], index: 1, kind: input, shape index: {}]   ;;  %s665_s2 = inlined_call_operand.vmem [shape: f32[32,2], index: 2, kind: input, shape index: {}]   ;;  %s666_s3 = inlined_call_operand.hbm [shape: f32[2,32,256], index: 3, kind: output, shape index: {}]  }
   0x1   :  { %9 = vsyncpa [#allocation4], 0  ;;  %s14_s14 = sshll.u32 %s663_s0, 4  ;;  %s447_s15 = smov [#allocation2]   ;;  %s15_s14 = int_to_ptr.hbm [resolvable:$true] %s14_s14 }
   0x2   :  { %s16_s16 = sshll.u32 %s447_s15, 4  ;;  %s448_s17 = smov 256   ;;  %s17_s16 = int_to_ptr.vmem [resolvable:$true] %s16_s16 }
   0x3   :  { %s449_s18 = smov 16  }
   0x4   :  { %22 = dma.hbm_to_vmem [thread:$0]  %s15_s14, 2048, %s17_s16, [#allocation3], %s448_s17, %s448_s17, %s449_s18  }
   0x5   :  { %443 = dma.done.wait [#allocation3], 2048  }
   0x6   :  { %444 = vsyncadd [#allocation3], 4294965248  ;;  %v477_v0 = vld [vmem:[#allocation2 + $0x40] sm:$0xff]  ;;  %v479_v1 = vld [vmem:[#allocation2 + $0x48] sm:$0xff]  ;;  %vm91_vm0 = vcmask 15360   ;;  %s346_s9 = sshll.u32 %s666_s3, 4  ;;  %s347_s9 = int_to_ptr.hbm [resolvable:$true] %s346_s9 }
   0x7   :  { %v481_v2 = vld [vmem:[#allocation2] sm:$0xff]  ;;  %v59_v3 = vadd.f32 %v479_v1, %v477_v0  ;;  %v485_v4 = vld [vmem:[#allocation2 + $0x8] sm:$0xff]  ;;  %v495_v9 = vld [vmem:[#allocation2 + $0x50] sm:$0xff] }
   0x8   :  { %v487_v5 = vld [vmem:[#allocation2 + $0x20] sm:$0xff]  ;;  %v489_v6 = vld [vmem:[#allocation2 + $0x28] sm:$0xff]  ;;  %v47_v7 = vadd.f32 %v485_v4, %v481_v2  ;;  %v497_v10 = vld [vmem:[#allocation2 + $0x58] sm:$0xff] }
   0x9   :  { %v53_v8 = vadd.f32 %v489_v6, %v487_v5  ;;  %60 = vadd.xlane.f32.xlu1 %v59_v3  ;;  %v499_v11 = vld [vmem:[#allocation2 + $0x10] sm:$0xff]  ;;  %v501_v12 = vld [vmem:[#allocation2 + $0x18] sm:$0xff]  ;;  %v503_v13 = vld [vmem:[#allocation2 + $0x60] sm:$0xff]  ;;  %v62_v15 = vadd.f32 %v497_v10, %v495_v9 }
   0xa   :  { %48 = vadd.xlane.f32.xlu0 %v47_v7  ;;  %v505_v14 = vld [vmem:[#allocation2 + $0x68] sm:$0xff]  ;;  %v50_v16 = vadd.f32 %v501_v12, %v499_v11  ;;  %v513_v18 = vld [vmem:[#allocation2 + $0x70] sm:$0xff]  ;;  %v515_v19 = vld [vmem:[#allocation2 + $0x78] sm:$0xff] }
   0xb   :  { %54 = vadd.xlane.f32.xlu2 %v53_v8  ;;  %v65_v17 = vadd.f32 %v505_v14, %v503_v13  ;;  %v517_v20 = vld [vmem:[#allocation2 + $0x30] sm:$0xff]  ;;  %v519_v21 = vld [vmem:[#allocation2 + $0x38] sm:$0xff]  ;;  %v68_v22 = vadd.f32 %v515_v19, %v513_v18  ;;  %v79_v28 = vld [vmem:[%s664_s1] sm:$0xff] }
   0xc   :  { %v56_v23 = vadd.f32 %v519_v21, %v517_v20  ;;  %v80_v30 = vld [vmem:[%s664_s1 + $0x8] sm:$0xff]  ;;  %v81_v36 = vld [vmem:[%s664_s1 + $0x10] sm:$0xff]  ;;  %v82_v50 = vld [vmem:[%s664_s1 + $0x18] sm:$0xff] }
  0x11   :  { %63 = vadd.xlane.f32.xlu1 %v62_v15 }
  0x12   :  { %51 = vadd.xlane.f32.xlu0 %v50_v16 }
  0x13   :  { %66 = vadd.xlane.f32.xlu2 %v65_v17 }
  0x19   :  { %69 = vadd.xlane.f32.xlu1 %v68_v22 }
  0x1a   :  { %57 = vadd.xlane.f32.xlu0 %v56_v23 }
  0x7c   :  { %v61_v24 = vpop.xlane.xlu1 %60 }
  0x7d   :  { %v49_v25 = vpop.xlane.xlu0 %48  ;;  %v75_v27 = vmul.f32 0.00390625, %v61_v24 }
  0x7e   :  { %v55_v26 = vpop.xlane.xlu2 %54  ;;  %v71_v29 = vmul.f32 0.00390625, %v49_v25 }
  0x7f   :  { %v87_v32 = vmul.f32 %v79_v28, %v75_v27  ;;  %v73_v37 = vmul.f32 0.00390625, %v55_v26 }
  0x80   :  { %v83_v41 = vmul.f32 %v79_v28, %v71_v29  ;;  %v122_v29 = vld [vmem:[%s665_s2 + $0x10] sm:$0xff] }
  0x81   :  { %v105_v43 = vsel %vm91_vm0, %v87_v32, 0.0  ;;  %v85_v46 = vmul.f32 %v81_v36, %v73_v37 }
  0x82   :  { %v92_v48 = vsel %vm91_vm0, %v83_v41, 0.0  ;;  %v123_v41 = vld [vmem:[%s665_s2 + $0x18] sm:$0xff] }
  0x83   :  { %v95_v56 = vsel %vm91_vm0, %v85_v46, 0.0 }
  0x84   :  { %v64_v31 = vpop.xlane.xlu1 %63 }
  0x85   :  { %v76_v33 = vmul.f32 0.00390625, %v64_v31  ;;  %v52_v34 = vpop.xlane.xlu0 %51  ;;  %v120_v31 = vld [vmem:[%s665_s2] sm:$0xff] }
  0x86   :  { %v67_v35 = vpop.xlane.xlu2 %66  ;;  %v72_v38 = vmul.f32 0.00390625, %v52_v34 }
  0x87   :  { %v77_v39 = vmul.f32 0.00390625, %v67_v35  ;;  %v88_v40 = vmul.f32 %v80_v30, %v76_v33 }
  0x88   :  { %v84_v42 = vmul.f32 %v80_v30, %v72_v38  ;;  %v121_v30 = vld [vmem:[%s665_s2 + $0x8] sm:$0xff]  ;;  %s450_s2 = smov [#allocation5]  }
  0x89   :  { %v106_v44 = vsel %vm91_vm0, %v88_v40, 0.0  ;;  %v89_v45 = vmul.f32 %v81_v36, %v77_v39  ;;  %s344_s6 = sshll.u32 %s450_s2, 4  ;;  %s345_s6 = int_to_ptr.vmem [resolvable:$true] %s344_s6 }
  0x8a   :  { %v93_v47 = vsel %vm91_vm0, %v84_v42, 0.0  ;;  %v107_v49 = vadd.f32 %v106_v44, %v105_v43 }
  0x8b   :  { %v94_v52 = vadd.f32 %v93_v47, %v92_v48  ;;  %v108_v53 = vsel %vm91_vm0, %v89_v45, 0.0 }
  0x8c   :  { %v70_v51 = vpop.xlane.xlu1 %69  ;;  %v109_v59 = vadd.f32 %v108_v53, %v107_v49 }
  0x8d   :  { %v78_v54 = vmul.f32 0.00390625, %v70_v51  ;;  %v58_v55 = vpop.xlane.xlu0 %57  ;;  %v96_v62 = vadd.f32 %v95_v56, %v94_v52 }
  0x8e   :  { %v74_v57 = vmul.f32 0.00390625, %v58_v55 }
  0x8f   :  { %v90_v58 = vmul.f32 %v82_v50, %v78_v54 }
  0x90   :  { %v86_v60 = vmul.f32 %v82_v50, %v74_v57 }
  0x91   :  { %v110_v61 = vsel %vm91_vm0, %v90_v58, 0.0 }
  0x92   :  { %v111_v63 = vadd.f32 %v110_v61, %v109_v59  ;;  %v97_v3 = vsel %vm91_vm0, %v86_v60, 0.0 }
  0x93   :  { %v98_v7 = vadd.f32 %v97_v3, %v96_v62 }
  0x94   :  { %v112_v8 = vrot.slane %v111_v63, 4 }
  0x95   :  { %v99_v15 = vrot.slane %v98_v7, 4 }
  0x96   :  { %v113_v16 = vadd.f32 %v112_v8, %v111_v63 }
  0x97   :  { %v100_v17 = vadd.f32 %v99_v15, %v98_v7 }
  0x98   :  { %v114_v22 = vrot.slane %v113_v16, 2 }
  0x99   :  { %v101_v23 = vrot.slane %v100_v17, 2 }
  0x9a   :  { %v115_v24 = vadd.f32 %v114_v22, %v113_v16 }
  0x9b   :  { %v102_v25 = vadd.f32 %v101_v23, %v100_v17 }
  0x9c   :  { %v116_v26 = vrot.slane %v115_v24, 1 }
  0x9d   :  { %v103_v27 = vrot.slane %v102_v25, 1 }
  0x9e   :  { %v117_v33 = vadd.f32 %v116_v26, %v115_v24 }
  0x9f   :  { %v104_v28 = vadd.f32 %v103_v27, %v102_v25 }
  0xa0   :  { %v119_v40 = vmax.f32 %v117_v33, 0.0 }
  0xa1   :  { %v118_v32 = vmax.f32 %v104_v28, 0.0 }
  0xa2   :  { %v129_v42 = vmul.f32 %v121_v30, %v119_v40  ;;  %v128_v43 = vmul.f32 %v120_v31, %v119_v40  ;;  %v131_v48 = vmul.f32 %v123_v41, %v119_v40  ;;  %v130_v49 = vmul.f32 %v122_v29, %v119_v40 }
  0xa3   :  { %v126_v34 = vmul.f32 %v122_v29, %v118_v32  ;;  %v125_v35 = vmul.f32 %v121_v30, %v118_v32  ;;  %v124_v36 = vmul.f32 %v120_v31, %v118_v32  ;;  %v127_v44 = vmul.f32 %v123_v41, %v118_v32 }
  0xa4   :  { %v147_v45 = vsel %vm91_vm0, %v129_v42, 0.0  ;;  %v144_v46 = vsel %vm91_vm0, %v128_v43, 0.0  ;;  %v153_v50 = vsel %vm91_vm0, %v131_v48, 0.0  ;;  %v150_v51 = vsel %vm91_vm0, %v130_v49, 0.0 }
  0xa5   :  { %v138_v37 = vsel %vm91_vm0, %v126_v34, 0.0  ;;  %v135_v38 = vsel %vm91_vm0, %v125_v35, 0.0  ;;  %v132_v39 = vsel %vm91_vm0, %v124_v36, 0.0  ;;  %v141_v47 = vsel %vm91_vm0, %v127_v44, 0.0 }
  0xa6   :  { %139 = vadd.xlane.f32.xlu1 %v138_v37  ;;  %136 = vadd.xlane.f32.xlu0 %v135_v38 }
  0xa7   :  { %133 = vadd.xlane.f32.xlu2 %v132_v39 }
  0xae   :  { %148 = vadd.xlane.f32.xlu1 %v147_v45  ;;  %145 = vadd.xlane.f32.xlu0 %v144_v46 }
  0xaf   :  { %142 = vadd.xlane.f32.xlu2 %v141_v47 }
  0xb6   :  { %154 = vadd.xlane.f32.xlu0 %v153_v50 }
  0xb7   :  { %151 = vadd.xlane.f32.xlu2 %v150_v51 }
 0x119   :  { %v140_v52 = vpop.xlane.xlu1 %139  ;;  %v137_v53 = vpop.xlane.xlu0 %136 }
 0x11a   :  { %v158_v54 = vsub.f32 0.0, %v140_v52  ;;  %v157_v55 = vsub.f32 0.0, %v137_v53  ;;  %v134_v56 = vpop.xlane.xlu2 %133 }
 0x11b   :  { %v156_v57 = vsub.f32 0.0, %v134_v56 }
 0x11c   :  { %v168_v58 = vmul.f32 1.442695, %v158_v54  ;;  %v166_v59 = vmul.f32 1.442695, %v157_v55 }
 0x11d   :  { %v164_v60 = vmul.f32 1.442695, %v156_v57 }
 0x11e   :  { %363 = vpow2.f32 %v168_v58 }
 0x11f   :  { %365 = vpow2.f32 %v166_v59 }
 0x120   :  { %367 = vpow2.f32 %v164_v60 }
 0x121   :  { %v149_v61 = vpop.xlane.xlu1 %148  ;;  %v146_v62 = vpop.xlane.xlu0 %145 }
 0x122   :  { %v161_v63 = vsub.f32 0.0, %v149_v61  ;;  %v160_v3 = vsub.f32 0.0, %v146_v62  ;;  %v143_v7 = vpop.xlane.xlu2 %142 }
 0x123   :  { %v159_v8 = vsub.f32 0.0, %v143_v7 }
 0x124   :  { %v364_v15 = vpop.eup %363  ;;  %v174_v16 = vmul.f32 1.442695, %v161_v63  ;;  %v172_v23 = vmul.f32 1.442695, %v160_v3 }
 0x125   :  { %v366_v17 = vpop.eup %365  ;;  %v182_v22 = vadd.f32 1.0, %v364_v15  ;;  %v170_v26 = vmul.f32 1.442695, %v159_v8 }
 0x126   :  { %v368_v24 = vpop.eup %367  ;;  %v181_v25 = vadd.f32 1.0, %v366_v17  ;;  %369 = vpow2.f32 %v174_v16 }
 0x127   :  { %371 = vrcp.f32 %v182_v22  ;;  %v565_v27 = vadd.f32 1.0, %v368_v24  ;;  %v227_v31 = vand.u32 2147483647, %v182_v22  ;;  %v229_v32 = vand.u32 2147483648, %v182_v22 }
 0x128   :  { %373 = vrcp.f32 %v181_v25  ;;  %v212_v34 = vand.u32 2147483647, %v181_v25  ;;  %v214_v37 = vand.u32 2147483648, %v181_v25  ;;  %vm223_vm1 = vweird.f32 %v182_v22 }
 0x129   :  { %375 = vpow2.f32 %v172_v23  ;;  %v155_v28 = vpop.xlane.xlu0 %154  ;;  %vm208_vm2 = vweird.f32 %v181_v25  ;;  %vm570_vm3 = vcmp.eq.f32.partialorder %v227_v31, 8.507059e+37  ;;  %v230_v45 = vor.u32 1.1754944e-38, %v229_v32 }
 0x12a   :  { %377 = vpow2.f32 %v170_v26  ;;  %v163_v29 = vsub.f32 0.0, %v155_v28  ;;  %v152_v30 = vpop.xlane.xlu2 %151  ;;  %vm575_vm4 = vcmp.eq.f32.partialorder %v212_v34, 8.507059e+37  ;;  %v197_v50 = vand.u32 2147483647, %v565_v27 }
 0x12b   :  { %379 = vrcp.f32 %v565_v27  ;;  %v162_v35 = vsub.f32 0.0, %v152_v30  ;;  %v215_v54 = vor.u32 1.1754944e-38, %v214_v37  ;;  %v199_v59 = vand.u32 2147483648, %v565_v27 }
 0x12c   :  { %v370_v33 = vpop.eup %369  ;;  %v178_v39 = vmul.f32 1.442695, %v163_v29  ;;  %vm193_vm7 = vweird.f32 %v565_v27  ;;  %vm588_vm8 = vcmp.eq.f32.partialorder %v197_v50, 8.507059e+37 }
 0x12d   :  { %v372_v36 = vpop.eup %371  ;;  %v568_v38 = vadd.f32 1.0, %v370_v33  ;;  %v176_v42 = vmul.f32 1.442695, %v162_v35  ;;  %v200_v26 = vor.u32 1.1754944e-38, %v199_v59 }
 0x12e   :  { %v374_v40 = vpop.eup %373  ;;  %v219_v41 = vmul.f32 %v372_v36, %v182_v22  ;;  %vm224_vm5 = vweird.f32 %v372_v36 }
 0x12f   :  { %v376_v43 = vpop.eup %375  ;;  %v204_v46 = vmul.f32 %v374_v40, %v181_v25  ;;  %381 = vrcp.f32 %v568_v38  ;;  %vm209_vm6 = vweird.f32 %v374_v40  ;;  %vm225_vm9 = vmor %vm223_vm1, %vm224_vm5  ;;  %v272_v7 = vand.u32 2147483647, %v568_v38 }
 0x130   :  { %v378_v47 = vpop.eup %377  ;;  %v220_v48 = vsub.f32 1.0, %v219_v41  ;;  %v580_v51 = vadd.f32 1.0, %v376_v43  ;;  %383 = vpow2.f32 %v178_v39  ;;  %v274_v8 = vand.u32 2147483648, %v568_v38  ;;  %vm210_vm10 = vmor %vm208_vm2, %vm209_vm6 }
 0x131   :  { %v380_v52 = vpop.eup %379  ;;  %v205_v53 = vsub.f32 1.0, %v204_v46  ;;  %v582_v55 = vadd.f32 1.0, %v378_v47  ;;  %385 = vpow2.f32 %v176_v42  ;;  %vm268_vm12 = vweird.f32 %v568_v38 }
 0x132   :  { %v221_v56 = vmul.f32 %v372_v36, %v220_v48  ;;  %v189_v57 = vmul.f32 %v380_v52, %v565_v27  ;;  %387 = vrcp.f32 %v580_v51  ;;  %vm194_vm11 = vweird.f32 %v380_v52 }
 0x133   :  { %v206_v58 = vmul.f32 %v374_v40, %v205_v53  ;;  %389 = vrcp.f32 %v582_v55  ;;  %vm195_vm13 = vmor %vm193_vm7, %vm194_vm11  ;;  %vm610_vm14 = vcmp.eq.f32.partialorder %v272_v7, 8.507059e+37  ;;  %vm253_vm0 = vweird.f32 %v580_v51 }
 0x134   :  { %v222_v60 = vadd.f32 %v372_v36, %v221_v56  ;;  %v190_v61 = vsub.f32 1.0, %v189_v57  ;;  %v259_v46 = vand.u32 2147483648, %v580_v51  ;;  %v242_v49 = vand.u32 2147483647, %v582_v55 }
 0x135   :  { %v382_v63 = vpop.eup %381  ;;  %v207_v3 = vadd.f32 %v374_v40, %v206_v58  ;;  %v244_v50 = vand.u32 2147483648, %v582_v55  ;;  %vm238_vm6 = vweird.f32 %v582_v55 }
 0x136   :  { %v226_v15 = vsel %vm225_vm9, %v372_v36, %v222_v60  ;;  %v191_v16 = vmul.f32 %v380_v52, %v190_v61  ;;  %v264_v17 = vmul.f32 %v382_v63, %v568_v38  ;;  %v384_v23 = vpop.eup %383  ;;  %vm269_vm15 = vweird.f32 %v382_v63 }
 0x137   :  { %v231_v24 = vsel %vm570_vm3, %v230_v45, %v226_v15  ;;  %v211_v22 = vsel %vm210_vm10, %v374_v40, %v207_v3  ;;  %v386_v28 = vpop.eup %385  ;;  %v617_v40 = vadd.f32 1.0, %v384_v23  ;;  %vm270_vm1 = vmor %vm268_vm12, %vm269_vm15  ;;  %v260_v57 = vor.u32 1.1754944e-38, %v259_v46 }
 0x138   :  { %v312_v29 = vmul.f32 %v231_v24, %v487_v5  ;;  %v313_v30 = vmul.f32 %v231_v24, %v489_v6  ;;  %v216_v25 = vsel %vm575_vm4, %v215_v54, %v211_v22  ;;  %v192_v31 = vadd.f32 %v380_v52, %v191_v16  ;;  %v388_v32 = vpop.eup %387 }
 0x139   :  { %v310_v33 = vmul.f32 %v216_v25, %v499_v11  ;;  %v311_v34 = vmul.f32 %v216_v25, %v501_v12  ;;  %v265_v35 = vsub.f32 1.0, %v264_v17  ;;  %v275_v6 = vor.u32 1.1754944e-38, %v274_v8  ;;  %v390_v39 = vpop.eup %389 }
 0x13a   :  { %328 = vst [vmem:[#allocation5 + $0x20] sm:$0xff] %v312_v29  ;;  %v196_v5 = vsel %vm195_vm13, %v380_v52, %v192_v31  ;;  %v249_v37 = vmul.f32 %v388_v32, %v580_v51  ;;  %v619_v27 = vadd.f32 1.0, %v386_v28  ;;  %v234_v44 = vmul.f32 %v390_v39, %v582_v55 }
 0x13b   :  { %329 = vst [vmem:[#allocation5 + $0x28] sm:$0xff] %v313_v30  ;;  %v201_v11 = vsel %vm588_vm8, %v200_v26, %v196_v5  ;;  %v266_v12 = vmul.f32 %v382_v63, %v265_v35  ;;  %391 = vrcp.f32 %v617_v40  ;;  %vm254_vm2 = vweird.f32 %v388_v32 }
 0x13c   :  { %326 = vst [vmem:[#allocation5 + $0x10] sm:$0xff] %v310_v33  ;;  %v308_v41 = vmul.f32 %v201_v11, %v481_v2  ;;  %v309_v42 = vmul.f32 %v201_v11, %v485_v4  ;;  %v250_v43 = vsub.f32 1.0, %v249_v37  ;;  %v257_v2 = vand.u32 2147483647, %v580_v51  ;;  %vm255_vm4 = vmor %vm253_vm0, %vm254_vm2 }
 0x13d   :  { %327 = vst [vmem:[#allocation5 + $0x18] sm:$0xff] %v311_v34  ;;  %v267_v45 = vadd.f32 %v382_v63, %v266_v12  ;;  %v235_v4 = vsub.f32 1.0, %v234_v44  ;;  %393 = vrcp.f32 %v619_v27  ;;  %vm239_vm3 = vweird.f32 %v390_v39 }
 0x13e   :  { %324 = vst [vmem:[#allocation5] sm:$0xff] %v308_v41  ;;  %v251_v47 = vmul.f32 %v388_v32, %v250_v43  ;;  %vm258_vm5 = vcmp.eq.f32.partialorder %v257_v2, 8.507059e+37  ;;  %vm240_vm7 = vmor %vm238_vm6, %vm239_vm3  ;;  %vm243_vm8 = vcmp.eq.f32.partialorder %v242_v49, 8.507059e+37  ;;  %v245_v62 = vor.u32 1.1754944e-38, %v244_v50 }
 0x13f   :  { %325 = vst [vmem:[#allocation5 + $0x8] sm:$0xff] %v309_v42  ;;  %v271_v48 = vsel %vm270_vm1, %v382_v63, %v267_v45  ;;  %v236_v54 = vmul.f32 %v390_v39, %v235_v4  ;;  %v304_v17 = vand.u32 2147483648, %v617_v40  ;;  %vm298_vm10 = vweird.f32 %v617_v40 }
 0x140   :  { %v276_v52 = vsel %vm610_vm14, %v275_v6, %v271_v48  ;;  %v252_v53 = vadd.f32 %v388_v32, %v251_v47  ;;  %v289_v24 = vand.u32 2147483648, %v619_v27  ;;  %vm283_vm14 = vweird.f32 %v619_v27 }
 0x141   :  { %v318_v38 = vmul.f32 %v276_v52, %v495_v9  ;;  %v319_v56 = vmul.f32 %v276_v52, %v497_v10  ;;  %v237_v59 = vadd.f32 %v390_v39, %v236_v54  ;;  %v392_v60 = vpop.eup %391  ;;  %v305_v26 = vor.u32 1.1754944e-38, %v304_v17 }
 0x142   :  { %v256_v58 = vsel %vm255_vm4, %v388_v32, %v252_v53  ;;  %v294_v51 = vmul.f32 %v392_v60, %v617_v40  ;;  %vm299_vm9 = vweird.f32 %v392_v60  ;;  %v290_v25 = vor.u32 1.1754944e-38, %v289_v24 }
 0x143   :  { %334 = vst [vmem:[#allocation5 + $0x50] sm:$0xff] %v318_v38  ;;  %v261_v61 = vsel %vm258_vm5, %v260_v57, %v256_v58  ;;  %v241_v63 = vsel %vm240_vm7, %v390_v39, %v237_v59  ;;  %v394_v3 = vpop.eup %393  ;;  %vm300_vm12 = vmor %vm298_vm10, %vm299_vm9 }
 0x144   :  { %335 = vst [vmem:[#allocation5 + $0x58] sm:$0xff] %v319_v56  ;;  %v316_v9 = vmul.f32 %v261_v61, %v477_v0  ;;  %v317_v10 = vmul.f32 %v261_v61, %v479_v1  ;;  %v246_v7 = vsel %vm243_vm8, %v245_v62, %v241_v63  ;;  %v295_v15 = vsub.f32 1.0, %v294_v51 }
 0x145   :  { %v314_v8 = vmul.f32 %v246_v7, %v517_v20  ;;  %v315_v55 = vmul.f32 %v246_v7, %v519_v21  ;;  %v279_v16 = vmul.f32 %v394_v3, %v619_v27  ;;  %v302_v1 = vand.u32 2147483647, %v617_v40 }
 0x146   :  { %332 = vst [vmem:[#allocation5 + $0x40] sm:$0xff] %v316_v9  ;;  %v296_v0 = vmul.f32 %v392_v60, %v295_v15  ;;  %vm284_vm11 = vweird.f32 %v394_v3  ;;  %v287_v21 = vand.u32 2147483647, %v619_v27 }
 0x147   :  { %333 = vst [vmem:[#allocation5 + $0x48] sm:$0xff] %v317_v10  ;;  %v280_v23 = vsub.f32 1.0, %v279_v16  ;;  %vm303_vm13 = vcmp.eq.f32.partialorder %v302_v1, 8.507059e+37  ;;  %vm285_vm15 = vmor %vm283_vm14, %vm284_vm11 }
 0x148   :  { %330 = vst [vmem:[#allocation5 + $0x30] sm:$0xff] %v314_v8  ;;  %v297_v20 = vadd.f32 %v392_v60, %v296_v0  ;;  %vm288_vm0 = vcmp.eq.f32.partialorder %v287_v21, 8.507059e+37 }
 0x149   :  { %331 = vst [vmem:[#allocation5 + $0x38] sm:$0xff] %v315_v55  ;;  %v281_v22 = vmul.f32 %v394_v3, %v280_v23 }
 0x14a   :  { %v301_v28 = vsel %vm300_vm12, %v392_v60, %v297_v20 }
 0x14b   :  { %v282_v29 = vadd.f32 %v394_v3, %v281_v22  ;;  %v306_v30 = vsel %vm303_vm13, %v305_v26, %v301_v28 }
 0x14c   :  { %v322_v31 = vmul.f32 %v306_v30, %v513_v18  ;;  %v323_v32 = vmul.f32 %v306_v30, %v515_v19 }
 0x14d   :  { %v286_v33 = vsel %vm285_vm15, %v394_v3, %v282_v29 }
 0x14e   :  { %v291_v34 = vsel %vm288_vm0, %v290_v25, %v286_v33  ;;  %338 = vst [vmem:[#allocation5 + $0x70] sm:$0xff] %v322_v31 }
 0x14f   :  { %v320_v35 = vmul.f32 %v291_v34, %v503_v13  ;;  %v321_v36 = vmul.f32 %v291_v34, %v505_v14  ;;  %339 = vst [vmem:[#allocation5 + $0x78] sm:$0xff] %v323_v32 }
 0x151   :  { %336 = vst [vmem:[#allocation5 + $0x60] sm:$0xff] %v320_v35 }
 0x152   :  { %337 = vst [vmem:[#allocation5 + $0x68] sm:$0xff] %v321_v36 }
 0x153   :  { %352 = dma.vmem_to_hbm [thread:$0]  %s345_s6, 2048, %s347_s9, [#allocation4], %s448_s17, %s448_s17, %s449_s18  }
 0x154   :  { %445 = dma.done.wait [#allocation4], 2048  }
 0x155   :  { %446 = vsyncadd [#allocation4], 4294965248 }
 0x156   :  { %357 = vsyncpa [#allocation3], 1 }
 0x157   :  { %358 = vsyncpa [#allocation4], 1 }

</bundles_post_ra>
